<compile_context>
chip_gen: v7x
topology: tpu7x:2x2x1
jax: 0.10.0
libtpu: 0.0.40
codegen_flags: <defaults>
</compile_context>

<pallas_src>
import functools

import jax
import jax.numpy as jnp
from jax.experimental import pallas as pl
from jax.experimental.pallas import tpu as pltpu


# ----------------------------------------------------------------------------
# Pallas kernel: fused  gather/lerp  ->  silu(x @ W1 + b1)  ->  silu(h @ W2 + b2)
# ----------------------------------------------------------------------------
def _make_kernel(t_max: float):
    def kernel(t_ref, table_ref, w1_ref, b1_ref, w2_ref, b2_ref, o_ref):
        B = t_ref.shape[0]
        Tp = table_ref.shape[0]

        # ---- embedding lookup / lerp as a (B, Tp) @ (Tp, 128) matmul -------
        t = jnp.clip(t_ref[...], 0.0, t_max)            # (B, 1) f32, clamp OOB
        low = jnp.floor(t)
        frac = t - low                                   # 0 for integer steps
        low_i = low.astype(jnp.int32)
        high_i = jnp.ceil(t).astype(jnp.int32)
        ids = jax.lax.broadcasted_iota(jnp.int32, (B, Tp), 1)
        gw = (jnp.where(ids == low_i, 1.0 - frac, 0.0)
              + jnp.where(ids == high_i, frac, 0.0))     # (B, Tp) f32
        x = jnp.dot(gw, table_ref[...],
                    preferred_element_type=jnp.float32)  # (B, 128) f32

        # ---- MLP: bf16 operands on the MXU, f32 accumulation, f32 SiLU ----
        h = jnp.dot(x.astype(jnp.bfloat16), w1_ref[...],
                    preferred_element_type=jnp.float32) + b1_ref[...]   # (B, 512)
        h = h * jax.nn.sigmoid(h)                        # silu in f32
        y = jnp.dot(h.astype(jnp.bfloat16), w2_ref[...],
                    preferred_element_type=jnp.float32) + b2_ref[...]   # (B, Nb)
        o_ref[...] = y * jax.nn.sigmoid(y)               # silu in f32

    return kernel


def _default_n_split() -> int:
    """Use both TensorCores on v7x; single TC elsewhere."""
    try:
        kind = jax.devices()[0].device_kind.lower()
    except Exception:
        return 1
    return 2 if "v7" in kind else 1


def diff_embed_mlp(t, embedding, w1, b1, w2, b2, *, n_split: int = 1):
    """t: (B, 1) f32 (B % 8 == 0); embedding: (T, 128) f32;
    w1: (128, 512); b1: (1, 512); w2: (512, 512); b2: (1, 512).
    Returns (B, 512) f32 = silu(silu(lookup(t) @ W1 + b1) @ W2 + b2)."""
    B = t.shape[0]
    T, F = embedding.shape
    K, H = w1.shape
    _, N = w2.shape
    assert B % 8 == 0 and N % n_split == 0 and (N // n_split) % 128 == 0
    Nb = N // n_split

    # Pad the table rows to a multiple of 128 so the gather matmul's
    # contraction dim is fully tile-aligned (pad rows are never selected).
    Tp = ((T + 127) // 128) * 128
    table = jnp.pad(embedding.astype(jnp.float32), ((0, Tp - T), (0, 0)))

    w1b = w1.astype(jnp.bfloat16)           # stream weights as bf16
    w2b = w2.astype(jnp.bfloat16)
    b1f = b1.reshape(1, H).astype(jnp.float32)
    b2f = b2.reshape(1, N).astype(jnp.float32)

    kernel = _make_kernel(t_max=float(T - 1))
    return pl.pallas_call(
        kernel,
        out_shape=jax.ShapeDtypeStruct((B, N), jnp.float32),
        grid=(n_split,),
        in_specs=[
            pl.BlockSpec((B, 1), lambda i: (0, 0)),      # t
            pl.BlockSpec((Tp, F), lambda i: (0, 0)),     # embedding table
            pl.BlockSpec((K, H), lambda i: (0, 0)),      # W1 (bf16)
            pl.BlockSpec((1, H), lambda i: (0, 0)),      # b1
            pl.BlockSpec((H, Nb), lambda i: (0, i)),     # W2 (bf16), split on N
            pl.BlockSpec((1, Nb), lambda i: (0, i)),     # b2, split on N
        ],
        out_specs=pl.BlockSpec((B, Nb), lambda i: (0, i)),
        compiler_params=pltpu.CompilerParams(
            dimension_semantics=("parallel",)),
    )(t, table, w1b, b1f, w2b, b2f)


# ----------------------------------------------------------------------------
# Module-equivalent wrapper
# ----------------------------------------------------------------------------
def build_embedding(max_steps: int) -> jnp.ndarray:
    steps = jnp.arange(max_steps, dtype=jnp.float32)[:, None]         # (T, 1)
    dims = jnp.arange(64, dtype=jnp.float32)[None, :]                 # (1, 64)
    table = steps * 10.0 ** (dims * 4.0 / 63.0)                       # (T, 64)
    return jnp.concatenate([jnp.sin(table), jnp.cos(table)], axis=1)  # (T, 128)


def init_params(key):
    """Deterministic Linear(128,512) and Linear(512,512) params (fan_in-scaled)."""
    k1, k2, k3, k4 = jax.random.split(key, 4)
    s1 = 1.0 / jnp.sqrt(128.0)
    s2 = 1.0 / jnp.sqrt(512.0)
    w1 = jax.random.uniform(k1, (128, 512), jnp.float32, -s1, s1)
    b1 = jax.random.uniform(k2, (1, 512), jnp.float32, -s1, s1)
    w2 = jax.random.uniform(k3, (512, 512), jnp.float32, -s2, s2)
    b2 = jax.random.uniform(k4, (1, 512), jnp.float32, -s2, s2)
    return w1, b1, w2, b2


@functools.partial(jax.jit, static_argnames=("n_split",))
def _forward_impl(diffusion_step, embedding, w1, b1, w2, b2, *, n_split):
    # Integer steps are an exact table lookup; float steps are a lerp.  Both
    # are handled uniformly by the in-kernel two-hot gather (frac==0 for ints).
    t = diffusion_step.astype(jnp.float32).reshape(-1, 1)             # (B, 1)
    B = t.shape[0]
    Bp = ((B + 7) // 8) * 8                  # pad batch -> full vector stores
    if Bp != B:
        t = jnp.pad(t, ((0, Bp - B), (0, 0)))
    out = diff_embed_mlp(t, embedding, w1, b1, w2, b2, n_split=n_split)
    return out[:B]


def diffusion_embedding_forward(diffusion_step, embedding, w1, b1, w2, b2,
                                n_split=None):
    """Mirrors DiffusionEmbedding.forward; returns (B, 512) float32.
    Note: for best throughput batch many timesteps per call (amortizes the
    bf16 weight DMA over the batch)."""
    if n_split is None:
        n_split = _default_n_split()
    return _forward_impl(diffusion_step, embedding, w1, b1, w2, b2,
                         n_split=n_split)


# ----------------------------------------------------------------------------
if __name__ == "__main__":
    key = jax.random.PRNGKey(0)
    k_params, k_step = jax.random.split(key)

    max_steps = 50
    batch = 8

    embedding = build_embedding(max_steps)                 # (50, 128)
    w1, b1, w2, b2 = init_params(k_params)

    # ---- integer diffusion steps (the common path) -------------------------
    steps_int = jax.random.randint(k_step, (batch,), 0, max_steps,
                                   dtype=jnp.int32)
    out = jax.block_until_ready(
        diffusion_embedding_forward(steps_int, embedding, w1, b1, w2, b2))
    assert out.shape == (batch, 512), out.shape

    # Reference mirroring the kernel's bf16-operand / f32-accumulate scheme.
    w1b = w1.astype(jnp.bfloat16).astype(jnp.float32)
    w2b = w2.astype(jnp.bfloat16).astype(jnp.float32)
    x_ref = embedding[steps_int]
    h_ref = x_ref.astype(jnp.bfloat16).astype(jnp.float32) @ w1b + b1
    h_ref = h_ref * jax.nn.sigmoid(h_ref)
    y_ref = h_ref.astype(jnp.bfloat16).astype(jnp.float32) @ w2b + b2
    y_ref = y_ref * jax.nn.sigmoid(y_ref)
    err = float(jnp.max(jnp.abs(out - y_ref)))
    assert err < 5e-3, err

    # Loose check against the pure-f32 module semantics (bf16 weight streaming).
    hf = x_ref @ w1 + b1
    hf = hf * jax.nn.sigmoid(hf)
    yf = hf @ w2 + b2
    yf = yf * jax.nn.sigmoid(yf)
    err_f32 = float(jnp.max(jnp.abs(out - yf)))
    assert err_f32 < 2.5e-1, err_f32

    # ---- float (lerp) path --------------------------------------------------
    t_float = jax.random.uniform(k_step, (batch,), jnp.float32, 0.0,
                                 float(max_steps - 1))
    out_f = jax.block_until_ready(
        diffusion_embedding_forward(t_float, embedding, w1, b1, w2, b2))
    assert out_f.shape == (batch, 512)

    low_i = jnp.floor(t_float).astype(jnp.int32)
    high_i = jnp.ceil(t_float).astype(jnp.int32)
    frac = (t_float - low_i.astype(jnp.float32))[:, None]
    x_l = (1.0 - frac) * embedding[low_i] + frac * embedding[high_i]
    h_l = x_l.astype(jnp.bfloat16).astype(jnp.float32) @ w1b + b1
    h_l = h_l * jax.nn.sigmoid(h_l)
    y_l = h_l.astype(jnp.bfloat16).astype(jnp.float32) @ w2b + b2
    y_l = y_l * jax.nn.sigmoid(y_l)
    err_l = float(jnp.max(jnp.abs(out_f - y_l)))
    assert err_l < 1e-2, err_l

    # ---- non-multiple-of-8 batch exercises the padding path -----------------
    out_small = jax.block_until_ready(
        diffusion_embedding_forward(steps_int[:3], embedding, w1, b1, w2, b2))
    assert out_small.shape == (3, 512)
    assert float(jnp.max(jnp.abs(out_small - y_ref[:3]))) < 5e-3

    print("KERNEL_OK")
</pallas_src>

<mosaic_0001>
module attributes {stable_mosaic.version = 11 : i64} {
  func.func @kernel(%arg0: i32, %arg1: memref<8x1xf32, #tpu.memory_space<vmem>>, %arg2: memref<128x128xf32, #tpu.memory_space<vmem>>, %arg3: memref<128x512xbf16, #tpu.memory_space<vmem>>, %arg4: memref<1x512xf32, #tpu.memory_space<vmem>>, %arg5: memref<512x512xbf16, #tpu.memory_space<vmem>>, %arg6: memref<1x512xf32, #tpu.memory_space<vmem>>, %arg7: memref<8x512xf32, #tpu.memory_space<vmem>>) attributes {dimension_semantics = [#tpu.dimension_semantics<parallel>], iteration_bounds = array<i64: 1>, scalar_prefetch = 0 : i64, scratch_operands = 0 : i64, tpu.core_type = #tpu.core_type<tc>, window_params = [{pipeline_mode = #tpu.pipeline_mode<synchronous>, transform_indices = @transform_0, window_bounds = array<i64: 8, 1>}, {pipeline_mode = #tpu.pipeline_mode<synchronous>, transform_indices = @transform_1, window_bounds = array<i64: 128, 128>}, {pipeline_mode = #tpu.pipeline_mode<synchronous>, transform_indices = @transform_2, window_bounds = array<i64: 128, 512>}, {pipeline_mode = #tpu.pipeline_mode<synchronous>, transform_indices = @transform_3, window_bounds = array<i64: 1, 512>}, {transform_indices = @transform_4, window_bounds = array<i64: 512, 512>}, {transform_indices = @transform_5, window_bounds = array<i64: 1, 512>}, {transform_indices = @transform_6, window_bounds = array<i64: 8, 512>}]} {
    %c0 = arith.constant 0 : index
    %c0_0 = arith.constant 0 : index
    %0 = vector.load %arg1[%c0, %c0_0] : memref<8x1xf32, #tpu.memory_space<vmem>>, vector<8x1xf32>
    %cst = arith.constant 0.000000e+00 : f32
    %cst_1 = arith.constant 4.900000e+01 : f32
    %1 = vector.broadcast %cst : f32 to vector<8x1xf32>
    %2 = arith.maximumf %1, %0 : vector<8x1xf32>
    %3 = vector.broadcast %cst_1 : f32 to vector<8x1xf32>
    %4 = arith.minimumf %3, %2 : vector<8x1xf32>
    %5 = math.floor %4 : vector<8x1xf32>
    %6 = arith.subf %4, %5 : vector<8x1xf32>
    %7 = arith.fptosi %5 : vector<8x1xf32> to vector<8x1xi32>
    %8 = math.ceil %4 : vector<8x1xf32>
    %9 = arith.fptosi %8 : vector<8x1xf32> to vector<8x1xi32>
    %10 = tpu.iota {dimensions = array<i32: 1>} : vector<8x128xi32>
    %11 = vector.broadcast %7 : vector<8x1xi32> to vector<8x128xi32>
    %12 = arith.cmpi eq, %10, %11 : vector<8x128xi32>
    %cst_2 = arith.constant 1.000000e+00 : f32
    %13 = vector.broadcast %cst_2 : f32 to vector<8x1xf32>
    %14 = arith.subf %13, %6 : vector<8x1xf32>
    %cst_3 = arith.constant 0.000000e+00 : f32
    %15 = vector.shape_cast %14 : vector<8x1xf32> to vector<8x1xf32>
    %16 = vector.broadcast %15 : vector<8x1xf32> to vector<8x128xf32>
    %17 = vector.broadcast %cst_3 : f32 to vector<8x128xf32>
    %18 = arith.select %12, %16, %17 : vector<8x128xi1>, vector<8x128xf32>
    %19 = vector.broadcast %9 : vector<8x1xi32> to vector<8x128xi32>
    %20 = arith.cmpi eq, %10, %19 : vector<8x128xi32>
    %cst_4 = arith.constant 0.000000e+00 : f32
    %21 = vector.shape_cast %6 : vector<8x1xf32> to vector<8x1xf32>
    %22 = vector.broadcast %21 : vector<8x1xf32> to vector<8x128xf32>
    %23 = vector.broadcast %cst_4 : f32 to vector<8x128xf32>
    %24 = arith.select %20, %22, %23 : vector<8x128xi1>, vector<8x128xf32>
    %25 = arith.addf %18, %24 : vector<8x128xf32>
    %c0_5 = arith.constant 0 : index
    %c0_6 = arith.constant 0 : index
    %26 = vector.load %arg2[%c0_5, %c0_6] : memref<128x128xf32, #tpu.memory_space<vmem>>, vector<128x128xf32>
    %cst_7 = arith.constant dense<0.000000e+00> : vector<8x128xf32>
    %27 = tpu.matmul %25, %26, %cst_7 {dimension_numbers = #tpu.dot_dimension_numbers<[1], [0], [0], [1], [0, 0, 1, 1], [], []>} : vector<8x128xf32>, vector<128x128xf32>, vector<8x128xf32> -> vector<8x128xf32>
    %28 = arith.truncf %27 : vector<8x128xf32> to vector<8x128xbf16>
    %c0_8 = arith.constant 0 : index
    %c0_9 = arith.constant 0 : index
    %29 = vector.load %arg3[%c0_8, %c0_9] : memref<128x512xbf16, #tpu.memory_space<vmem>>, vector<128x512xbf16>
    %cst_10 = arith.constant dense<0.000000e+00> : vector<8x512xf32>
    %30 = tpu.matmul %28, %29, %cst_10 {dimension_numbers = #tpu.dot_dimension_numbers<[1], [0], [0], [1], [0, 0, 1, 1], [], []>} : vector<8x128xbf16>, vector<128x512xbf16>, vector<8x512xf32> -> vector<8x512xf32>
    %c0_11 = arith.constant 0 : index
    %c0_12 = arith.constant 0 : index
    %31 = vector.load %arg4[%c0_11, %c0_12] : memref<1x512xf32, #tpu.memory_space<vmem>>, vector<1x512xf32>
    %32 = vector.broadcast %31 : vector<1x512xf32> to vector<8x512xf32>
    %33 = arith.addf %30, %32 : vector<8x512xf32>
    %34 = arith.negf %33 : vector<8x512xf32>
    %35 = math.exp %34 : vector<8x512xf32>
    %cst_13 = arith.constant 1.000000e+00 : f32
    %36 = vector.broadcast %cst_13 : f32 to vector<8x512xf32>
    %37 = arith.addf %36, %35 : vector<8x512xf32>
    %38 = arith.divf %36, %37 : vector<8x512xf32>
    %39 = arith.mulf %33, %38 : vector<8x512xf32>
    %40 = arith.truncf %39 : vector<8x512xf32> to vector<8x512xbf16>
    %c0_14 = arith.constant 0 : index
    %c0_15 = arith.constant 0 : index
    %41 = vector.load %arg5[%c0_14, %c0_15] : memref<512x512xbf16, #tpu.memory_space<vmem>>, vector<512x512xbf16>
    %cst_16 = arith.constant dense<0.000000e+00> : vector<8x512xf32>
    %42 = tpu.matmul %40, %41, %cst_16 {dimension_numbers = #tpu.dot_dimension_numbers<[1], [0], [0], [1], [0, 0, 1, 1], [], []>} : vector<8x512xbf16>, vector<512x512xbf16>, vector<8x512xf32> -> vector<8x512xf32>
    %c0_17 = arith.constant 0 : index
    %c0_18 = arith.constant 0 : index
    %43 = vector.load %arg6[%c0_17, %c0_18] : memref<1x512xf32, #tpu.memory_space<vmem>>, vector<1x512xf32>
    %44 = vector.broadcast %43 : vector<1x512xf32> to vector<8x512xf32>
    %45 = arith.addf %42, %44 : vector<8x512xf32>
    %46 = arith.negf %45 : vector<8x512xf32>
    %47 = math.exp %46 : vector<8x512xf32>
    %cst_19 = arith.constant 1.000000e+00 : f32
    %48 = vector.broadcast %cst_19 : f32 to vector<8x512xf32>
    %49 = arith.addf %48, %47 : vector<8x512xf32>
    %50 = arith.divf %48, %49 : vector<8x512xf32>
    %51 = arith.mulf %45, %50 : vector<8x512xf32>
    %c0_20 = arith.constant 0 : index
    %c0_21 = arith.constant 0 : index
    %52 = vector.load %arg7[%c0_20, %c0_21] : memref<8x512xf32, #tpu.memory_space<vmem>>, vector<8x512xf32>
    tpu.vector_store %arg7[%c0_20, %c0_21], %51 {strides = array<i32>} : memref<8x512xf32, #tpu.memory_space<vmem>>, vector<8x512xf32>,
    return
  }
  func.func @transform_0(%arg0: i32) -> (i32, i32) {
    %c0_i32 = arith.constant 0 : i32
    %c0_i32_0 = arith.constant 0 : i32
    %c0_i32_1 = arith.constant 0 : i32
    return %c0_i32, %c0_i32_0 : i32, i32
  }
  func.func @transform_1(%arg0: i32) -> (i32, i32) {
    %c0_i32 = arith.constant 0 : i32
    %c0_i32_0 = arith.constant 0 : i32
    %c0_i32_1 = arith.constant 0 : i32
    return %c0_i32, %c0_i32_0 : i32, i32
  }
  func.func @transform_2(%arg0: i32) -> (i32, i32) {
    %c0_i32 = arith.constant 0 : i32
    %c0_i32_0 = arith.constant 0 : i32
    %c0_i32_1 = arith.constant 0 : i32
    return %c0_i32, %c0_i32_0 : i32, i32
  }
  func.func @transform_3(%arg0: i32) -> (i32, i32) {
    %c0_i32 = arith.constant 0 : i32
    %c0_i32_0 = arith.constant 0 : i32
    %c0_i32_1 = arith.constant 0 : i32
    return %c0_i32, %c0_i32_0 : i32, i32
  }
  func.func @transform_4(%arg0: i32) -> (i32, i32) {
    %c0_i32 = arith.constant 0 : i32
    %c0_i32_0 = arith.constant 0 : i32
    return %c0_i32, %arg0 : i32, i32
  }
  func.func @transform_5(%arg0: i32) -> (i32, i32) {
    %c0_i32 = arith.constant 0 : i32
    %c0_i32_0 = arith.constant 0 : i32
    return %c0_i32, %arg0 : i32, i32
  }
  func.func @transform_6(%arg0: i32) -> (i32, i32) {
    %c0_i32 = arith.constant 0 : i32
    %c0_i32_0 = arith.constant 0 : i32
    return %c0_i32, %arg0 : i32, i32
  }
}

</mosaic_0001>

<bundles_post_ra>
// kernel: _forward_impl.1
= control target key start
LH: loop header
LB: loop body
LE: loop exit
PB: predicated region body
PF: predicated region fallthrough
CT: control target
= control target key end

     0   :  { %v2035_v3 = vmov 0   ;;  %v2036_v8 = vmov 0.0|0.0   ;;  %vm2037_vm0 = vmmov 0   ;;  %v2038_v30 = vmov 0.0   ;;  %s2673_s0 = inlined_call_operand.vmem [shape: f32[8,1], index: 0, kind: input, shape index: {}]   ;;  %s2674_s1 = inlined_call_operand.vmem [shape: f32[128,128], index: 1, kind: input, shape index: {}]   ;;  %s2675_s2 = inlined_call_operand.vmem [shape: bf16[128,512], index: 2, kind: input, shape index: {}]   ;;  %s2676_s3 = inlined_call_operand.vmem [shape: f32[1,512], index: 3, kind: input, shape index: {}]   ;;  %s2677_s4 = inlined_call_operand.vmem [shape: bf16[512,512], index: 4, kind: input, shape index: {}]   ;;  %s2678_s5 = inlined_call_operand.vmem [shape: f32[1,512], index: 5, kind: input, shape index: {}]   ;;  %s2679_s6 = inlined_call_operand.hbm [shape: f32[8,512], index: 6, kind: output, shape index: {}]  }
   0x1   :  { %v25_v0 = vld [vmem:[%s2673_s0] sm:$0xff]  ;;  %v58_v2 = vld [vmem:[%s2674_s1 + $0x8] sm:$0xff]  ;;  %1738 = vset.pattern.permute.xlu1 %v2035_v3  ;;  %1737 = vset.pattern.permute.xlu0 %v2035_v3  ;;  %v59_v6 = vld [vmem:[%s2674_s1 + $0x10] sm:$0xff] }
   0x2   :  { %v57_v1 = vld [vmem:[%s2674_s1] sm:$0xff]  ;;  %v26_v4 = vmax.f32 %v25_v0, 0.0  ;;  %v60_v7 = vld [vmem:[%s2674_s1 + $0x18] sm:$0xff]  ;;  %1692 = vmatprep.subr.bf16.mxu0 %v2036_v8  ;;  %390 = vmatprep.mubr.bf16.mxu1 %v2035_v3  ;;  %v62_v12 = vld [vmem:[%s2674_s1 + $0x28] sm:$0xff] }
   0x3   :  { %v1693_v5 = vpack.c.bf16 %v58_v2, %v57_v1  ;;  %v1696_v10 = vpack.c.bf16 %v60_v7, %v59_v6  ;;  %v61_v11 = vld [vmem:[%s2674_s1 + $0x20] sm:$0xff]  ;;  %v63_v21 = vld [vmem:[%s2674_s1 + $0x30] sm:$0xff]  ;;  %v64_v22 = vld [vmem:[%s2674_s1 + $0x38] sm:$0xff]  ;;  %1689 = vmatprep.mubr.msk.f32.mxu0 %vm2037_vm0, %v2038_v30 }
   0x4   :  { %v27_v9 = vmin.f32 %v26_v4, 49.0  ;;  %v1699_v18 = vpack.c.bf16 %v62_v12, %v61_v11  ;;  %v1702_v24 = vpack.c.bf16 %v64_v22, %v63_v21  ;;  %v65_v25 = vld [vmem:[%s2674_s1 + $0x40] sm:$0xff]  ;;  %v66_v26 = vld [vmem:[%s2674_s1 + $0x48] sm:$0xff]  ;;  %v67_v27 = vld [vmem:[%s2674_s1 + $0x50] sm:$0xff] }
   0x5   :  { %1694 = vmatpush3.bf16.msra.mxu0 %v1693_v5  ;;  %v68_v28 = vld [vmem:[%s2674_s1 + $0x58] sm:$0xff]  ;;  %v1705_v29 = vpack.c.bf16 %v66_v26, %v65_v25  ;;  %v1739_v31 = vld [vmem:[%s2675_s2 + $0x4] ss:$16 sps:$4 sm:$0xff]   ;;  %v1744_v34 = vld [vmem:[%s2675_s2] ss:$16 sps:$4 sm:$0xff]  }
   0x6   :  { %1695 = vmatprep.subr.bf16.mxu0 %v2036_v8  ;;  %v28_v13 = vfloor.f32 %v27_v9  ;;  %v31_v14 = vceil.f32 %v27_v9  ;;  %v1708_v32 = vpack.c.bf16 %v68_v28, %v67_v27  ;;  %v69_v33 = vld [vmem:[%s2674_s1 + $0x60] sm:$0xff]  ;;  %v70_v36 = vld [vmem:[%s2674_s1 + $0x68] sm:$0xff]  ;;  %358 = vmatprep.subr.bf16.mxu1 %v1739_v31  ;;  %v71_v39 = vld [vmem:[%s2674_s1 + $0x70] sm:$0xff] }
   0x7   :  { %v1745_v35 = vld [vmem:[%s2675_s2 + $0x24] ss:$16 sps:$4 sm:$0xff]   ;;  %v1750_v37 = vld [vmem:[%s2675_s2 + $0x20] ss:$16 sps:$4 sm:$0xff]   ;;  %359 = vmatpush1.bf16.msra.mxu1 %v1744_v34  ;;  %v1711_v38 = vpack.c.bf16 %v70_v36, %v69_v33  ;;  %v72_v40 = vld [vmem:[%s2674_s1 + $0x78] sm:$0xff] }
   0x8   :  { %v1728_v15 = vtrunc.f32 %v28_v13  ;;  %v29_v16 = vsub.f32 %v27_v9, %v28_v13  ;;  %v1730_v17 = vtrunc.f32 %v31_v14  ;;  %360 = vmatprep.subr.bf16.mxu1 %v1745_v35  ;;  %v1751_v41 = vld [vmem:[%s2675_s2 + $0x44] ss:$16 sps:$4 sm:$0xff]   ;;  %v1756_v42 = vld [vmem:[%s2675_s2 + $0x40] ss:$16 sps:$4 sm:$0xff]   ;;  %v1714_v43 = vpack.c.bf16 %v72_v40, %v71_v39  ;;  %v1743_v44 = vld [vmem:[%s2675_s2 + $0xc] ss:$16 sps:$4 sm:$0xff]  }
   0x9   :  { %1697 = vmatpush3.bf16.msra.mxu0 %v1696_v10  ;;  %v1757_v45 = vld [vmem:[%s2675_s2 + $0x64] ss:$16 sps:$4 sm:$0xff]   ;;  %v1762_v46 = vld [vmem:[%s2675_s2 + $0x60] ss:$16 sps:$4 sm:$0xff]  }
   0xa   :  { %1698 = vmatprep.subr.bf16.mxu0 %v2036_v8  ;;  %v1729_v19 = vcvt.f32.s32 %v1728_v15  ;;  %v39_v20 = vsub.f32 1.0, %v29_v16  ;;  %v1731_v23 = vcvt.f32.s32 %v1730_v17  ;;  %v1763_v47 = vld [vmem:[%s2675_s2 + $0x84] ss:$16 sps:$4 sm:$0xff]   ;;  %v1768_v48 = vld [vmem:[%s2675_s2 + $0x80] ss:$16 sps:$4 sm:$0xff]  }
   0xb   :  { %361 = vmatpush1.bf16.msra.mxu1 %v1750_v37  ;;  %v1769_v49 = vld [vmem:[%s2675_s2 + $0xa4] ss:$16 sps:$4 sm:$0xff]   ;;  %v1774_v50 = vld [vmem:[%s2675_s2 + $0xa0] ss:$16 sps:$4 sm:$0xff]  }
   0xc   :  { %36 = vperm.xlu0 %1737, %v1729_v19   ;;  %42 = vperm.xlu1 %1738, %v39_v20   ;;  %v1775_v51 = vld [vmem:[%s2675_s2 + $0xc4] ss:$16 sps:$4 sm:$0xff]   ;;  %v1780_v52 = vld [vmem:[%s2675_s2 + $0xc0] ss:$16 sps:$4 sm:$0xff]  }
   0xd   :  { %1700 = vmatpush3.bf16.msra.mxu0 %v1699_v18  ;;  %362 = vmatprep.subr.bf16.mxu1 %v1751_v41  ;;  %v1781_v53 = vld [vmem:[%s2675_s2 + $0xe4] ss:$16 sps:$4 sm:$0xff]  }
   0xe   :  { %1701 = vmatprep.subr.bf16.mxu0 %v2036_v8 }
   0xf   :  { %363 = vmatpush1.bf16.msra.mxu1 %v1756_v42 }
  0x10   :  { %47 = vperm.xlu0 %1737, %v1731_v23   ;;  %52 = vperm.xlu1 %1738, %v29_v16  }
  0x11   :  { %1703 = vmatpush3.bf16.msra.mxu0 %v1702_v24  ;;  %364 = vmatprep.subr.bf16.mxu1 %v1757_v45 }
  0x12   :  { %1704 = vmatprep.subr.bf16.mxu0 %v2036_v8 }
  0x13   :  { %365 = vmatpush1.bf16.msra.mxu1 %v1762_v46 }
  0x14   :  { %366 = vmatprep.subr.bf16.mxu1 %v1763_v47 }
  0x15   :  { %1706 = vmatpush3.bf16.msra.mxu0 %v1705_v29 }
  0x16   :  { %1707 = vmatprep.subr.bf16.mxu0 %v2036_v8 }
  0x17   :  { %367 = vmatpush1.bf16.msra.mxu1 %v1768_v48 }
  0x18   :  { %368 = vmatprep.subr.bf16.mxu1 %v1769_v49 }
  0x19   :  { %1709 = vmatpush3.bf16.msra.mxu0 %v1708_v32 }
  0x1a   :  { %1710 = vmatprep.subr.bf16.mxu0 %v2036_v8 }
  0x1b   :  { %369 = vmatpush1.bf16.msra.mxu1 %v1774_v50 }
  0x1c   :  { %370 = vmatprep.subr.bf16.mxu1 %v1775_v51 }
  0x1d   :  { %1712 = vmatpush3.bf16.msra.mxu0 %v1711_v38 }
  0x1e   :  { %1713 = vmatprep.subr.bf16.mxu0 %v2036_v8 }
  0x1f   :  { %371 = vmatpush1.bf16.msra.mxu1 %v1780_v52 }
  0x20   :  { %372 = vmatprep.subr.bf16.mxu1 %v1781_v53 }
  0x21   :  { %1715 = vmatpush3.bf16.msra.mxu0 %v1714_v43 }
  0x22   :  { %399 = vmatprep.subr.bf16.mxu0 %v1743_v44 }
  0x23   :  { %11 = vsyncpa [#allocation3], 0  ;;  %v33_v54 = vlaneseq  ;;  %v1741_v62 = vld [vmem:[%s2675_s2 + $0x8] ss:$16 sps:$4 sm:$0xff]   ;;  %v1749_v0 = vld [vmem:[%s2675_s2 + $0x2c] ss:$16 sps:$4 sm:$0xff]  }
  0x24   :  { %v1747_v1 = vld [vmem:[%s2675_s2 + $0x28] ss:$16 sps:$4 sm:$0xff]   ;;  %v1755_v2 = vld [vmem:[%s2675_s2 + $0x4c] ss:$16 sps:$4 sm:$0xff]   ;;  %v1786_v14 = vld [vmem:[%s2675_s2 + $0xe0] ss:$16 sps:$4 sm:$0xff]  }
  0x25   :  { %v34_v55 = vand.u32 127, %v33_v54  ;;  %v1753_v4 = vld [vmem:[%s2675_s2 + $0x48] ss:$16 sps:$4 sm:$0xff]   ;;  %v1761_v5 = vld [vmem:[%s2675_s2 + $0x6c] ss:$16 sps:$4 sm:$0xff]   ;;  %373 = vmatpush1.bf16.msra.mxu1 %v1786_v14 }
  0x26   :  { %v1767_v6 = vld [vmem:[%s2675_s2 + $0x8c] ss:$16 sps:$4 sm:$0xff]   ;;  %v1765_v7 = vld [vmem:[%s2675_s2 + $0x88] ss:$16 sps:$4 sm:$0xff]   ;;  %v1789_v15 = vld [vmem:[%s2677_s4 + $0x4] ss:$16 sps:$4 sm:$0xff]  }
  0x27   :  { %v1773_v8 = vld [vmem:[%s2675_s2 + $0xac] ss:$16 sps:$4 sm:$0xff]   ;;  %v1771_v9 = vld [vmem:[%s2675_s2 + $0xa8] ss:$16 sps:$4 sm:$0xff]   ;;  %1262 = vmatprep.subr.bf16.mxu1 %v1789_v15  ;;  %v1787_v18 = vld [vmem:[%s2677_s4] ss:$16 sps:$4 sm:$0xff]  }
  0x28   :  { %v1779_v10 = vld [vmem:[%s2675_s2 + $0xcc] ss:$16 sps:$4 sm:$0xff]   ;;  %v1777_v11 = vld [vmem:[%s2675_s2 + $0xc8] ss:$16 sps:$4 sm:$0xff]   ;;  %v1795_v22 = vld [vmem:[%s2677_s4 + $0x24] ss:$16 sps:$4 sm:$0xff]  }
  0x29   :  { %v1785_v12 = vld [vmem:[%s2675_s2 + $0xec] ss:$16 sps:$4 sm:$0xff]   ;;  %v1783_v13 = vld [vmem:[%s2675_s2 + $0xe8] ss:$16 sps:$4 sm:$0xff]   ;;  %v1793_v24 = vld [vmem:[%s2677_s4 + $0x20] ss:$16 sps:$4 sm:$0xff]  }
  0x2a   :  { %v1792_v16 = vld [vmem:[%s2677_s4 + $0xc] ss:$16 sps:$4 sm:$0xff]   ;;  %v1790_v19 = vld [vmem:[%s2677_s4 + $0x8] ss:$16 sps:$4 sm:$0xff]   ;;  %v1801_v26 = vld [vmem:[%s2677_s4 + $0x44] ss:$16 sps:$4 sm:$0xff]  }
  0x2b   :  { %v1798_v23 = vld [vmem:[%s2677_s4 + $0x2c] ss:$16 sps:$4 sm:$0xff]   ;;  %v1796_v25 = vld [vmem:[%s2677_s4 + $0x28] ss:$16 sps:$4 sm:$0xff]   ;;  %v1799_v28 = vld [vmem:[%s2677_s4 + $0x40] ss:$16 sps:$4 sm:$0xff]  }
  0x2c   :  { %v1804_v27 = vld [vmem:[%s2677_s4 + $0x4c] ss:$16 sps:$4 sm:$0xff]   ;;  %v1802_v29 = vld [vmem:[%s2677_s4 + $0x48] ss:$16 sps:$4 sm:$0xff]   ;;  %v1807_v30 = vld [vmem:[%s2677_s4 + $0x64] ss:$16 sps:$4 sm:$0xff]  }
  0x2d   :  { %v1810_v31 = vld [vmem:[%s2677_s4 + $0x6c] ss:$16 sps:$4 sm:$0xff]   ;;  %v1805_v32 = vld [vmem:[%s2677_s4 + $0x60] ss:$16 sps:$4 sm:$0xff]   ;;  %v1808_v33 = vld [vmem:[%s2677_s4 + $0x68] ss:$16 sps:$4 sm:$0xff]  }
  0x2e   :  { %v1813_v34 = vld [vmem:[%s2677_s4 + $0x84] ss:$16 sps:$4 sm:$0xff]   ;;  %v1816_v35 = vld [vmem:[%s2677_s4 + $0x8c] ss:$16 sps:$4 sm:$0xff]   ;;  %v1811_v36 = vld [vmem:[%s2677_s4 + $0x80] ss:$16 sps:$4 sm:$0xff]  }
  0x2f   :  { %v1814_v37 = vld [vmem:[%s2677_s4 + $0x88] ss:$16 sps:$4 sm:$0xff]   ;;  %v1819_v38 = vld [vmem:[%s2677_s4 + $0xa4] ss:$16 sps:$4 sm:$0xff]   ;;  %v1822_v39 = vld [vmem:[%s2677_s4 + $0xac] ss:$16 sps:$4 sm:$0xff]  }
  0x30   :  { %v1817_v40 = vld [vmem:[%s2677_s4 + $0xa0] ss:$16 sps:$4 sm:$0xff]   ;;  %v1820_v41 = vld [vmem:[%s2677_s4 + $0xa8] ss:$16 sps:$4 sm:$0xff]   ;;  %v1825_v42 = vld [vmem:[%s2677_s4 + $0xc4] ss:$16 sps:$4 sm:$0xff]  }
  0x31   :  { %v1828_v43 = vld [vmem:[%s2677_s4 + $0xcc] ss:$16 sps:$4 sm:$0xff]   ;;  %v1823_v44 = vld [vmem:[%s2677_s4 + $0xc0] ss:$16 sps:$4 sm:$0xff]   ;;  %v1826_v45 = vld [vmem:[%s2677_s4 + $0xc8] ss:$16 sps:$4 sm:$0xff]  }
  0x32   :  { %v1831_v46 = vld [vmem:[%s2677_s4 + $0xe4] ss:$16 sps:$4 sm:$0xff]   ;;  %v1834_v47 = vld [vmem:[%s2677_s4 + $0xec] ss:$16 sps:$4 sm:$0xff]   ;;  %v1829_v48 = vld [vmem:[%s2677_s4 + $0xe0] ss:$16 sps:$4 sm:$0xff]  }
  0x33   :  { %v1832_v49 = vld [vmem:[%s2677_s4 + $0xe8] ss:$16 sps:$4 sm:$0xff]   ;;  %v1837_v50 = vld [vmem:[%s2677_s4 + $0x104] ss:$16 sps:$4 sm:$0xff]   ;;  %v1840_v51 = vld [vmem:[%s2677_s4 + $0x10c] ss:$16 sps:$4 sm:$0xff]  }
  0x34   :  { %v1835_v52 = vld [vmem:[%s2677_s4 + $0x100] ss:$16 sps:$4 sm:$0xff]   ;;  %v1838_v53 = vld [vmem:[%s2677_s4 + $0x108] ss:$16 sps:$4 sm:$0xff]   ;;  %v1879_v15 = vld [vmem:[%s2677_s4 + $0x1e4] ss:$16 sps:$4 sm:$0xff]  }
  0x35   :  { %v1874_v14 = vld [vmem:[%s2677_s4 + $0x1c8] ss:$16 sps:$4 sm:$0xff]  }
  0x8b   :  { %v37_v56 = vpop.permute.xlu0 %36  ;;  %v43_v57 = vpop.permute.xlu1 %42 }
  0x8c   :  { %vm38_vm1 = vcmp.eq.s32.totalorder %v34_v55, %v37_v56  ;;  %v1846_v56 = vld [vmem:[%s2677_s4 + $0x12c] ss:$16 sps:$4 sm:$0xff]  }
  0x8d   :  { %v45_v60 = vsel %vm38_vm1, %v43_v57, 0.0  ;;  %v1841_v57 = vld [vmem:[%s2677_s4 + $0x120] ss:$16 sps:$4 sm:$0xff]  }
  0x8f   :  { %v48_v58 = vpop.permute.xlu0 %47  ;;  %v53_v59 = vpop.permute.xlu1 %52 }
  0x90   :  { %vm49_vm2 = vcmp.eq.s32.totalorder %v34_v55, %v48_v58  ;;  %v1843_v55 = vld [vmem:[%s2677_s4 + $0x124] ss:$16 sps:$4 sm:$0xff]   ;;  %v1844_v58 = vld [vmem:[%s2677_s4 + $0x128] ss:$16 sps:$4 sm:$0xff]  }
  0x91   :  { %v55_v61 = vsel %vm49_vm2, %v53_v59, 0.0  ;;  %v1849_v59 = vld [vmem:[%s2677_s4 + $0x144] ss:$16 sps:$4 sm:$0xff]  }
  0x92   :  { %v56_v63 = vadd.f32 %v55_v61, %v45_v60  ;;  %v1852_v60 = vld [vmem:[%s2677_s4 + $0x14c] ss:$16 sps:$4 sm:$0xff]   ;;  %v1847_v61 = vld [vmem:[%s2677_s4 + $0x140] ss:$16 sps:$4 sm:$0xff]  }
  0x94   :  { %1690 = vmatmul.mubr.f32.vlgmr.msra.gmra.mrb[0].mxu0 %v56_v63  ;;  %v1855_v63 = vld [vmem:[%s2677_s4 + $0x164] ss:$16 sps:$4 sm:$0xff]  }
  0x95   :  { %400 = vmatpush1.bf16.msra.mxu0 %v1741_v62  ;;  %431 = vmatprep.mubr.bf16.mxu0 %v2035_v3  ;;  %v1759_v3 = vld [vmem:[%s2675_s2 + $0x68] ss:$16 sps:$4 sm:$0xff]  }
  0x96   :  { %401 = vmatprep.subr.bf16.mxu0 %v1749_v0  ;;  %v1850_v62 = vld [vmem:[%s2677_s4 + $0x148] ss:$16 sps:$4 sm:$0xff]   ;;  %v1858_v0 = vld [vmem:[%s2677_s4 + $0x16c] ss:$16 sps:$4 sm:$0xff]  }
  0x99   :  { %402 = vmatpush1.bf16.msra.mxu0 %v1747_v1  ;;  %v1853_v1 = vld [vmem:[%s2677_s4 + $0x160] ss:$16 sps:$4 sm:$0xff]  }
  0x9a   :  { %403 = vmatprep.subr.bf16.mxu0 %v1755_v2  ;;  %v1856_v2 = vld [vmem:[%s2677_s4 + $0x168] ss:$16 sps:$4 sm:$0xff]  }
  0x9d   :  { %404 = vmatpush1.bf16.msra.mxu0 %v1753_v4  ;;  %v1861_v4 = vld [vmem:[%s2677_s4 + $0x184] ss:$16 sps:$4 sm:$0xff]  }
  0x9e   :  { %405 = vmatprep.subr.bf16.mxu0 %v1761_v5  ;;  %v1864_v5 = vld [vmem:[%s2677_s4 + $0x18c] ss:$16 sps:$4 sm:$0xff]  }
  0xa1   :  { %406 = vmatpush1.bf16.msra.mxu0 %v1759_v3  ;;  %v1859_v3 = vld [vmem:[%s2677_s4 + $0x180] ss:$16 sps:$4 sm:$0xff]  }
  0xa2   :  { %407 = vmatprep.subr.bf16.mxu0 %v1767_v6  ;;  %v1862_v6 = vld [vmem:[%s2677_s4 + $0x188] ss:$16 sps:$4 sm:$0xff]  }
  0xa5   :  { %408 = vmatpush1.bf16.msra.mxu0 %v1765_v7  ;;  %v1867_v7 = vld [vmem:[%s2677_s4 + $0x1a4] ss:$16 sps:$4 sm:$0xff]  }
  0xa6   :  { %409 = vmatprep.subr.bf16.mxu0 %v1773_v8  ;;  %v1870_v8 = vld [vmem:[%s2677_s4 + $0x1ac] ss:$16 sps:$4 sm:$0xff]  }
  0xa9   :  { %410 = vmatpush1.bf16.msra.mxu0 %v1771_v9  ;;  %v1865_v9 = vld [vmem:[%s2677_s4 + $0x1a0] ss:$16 sps:$4 sm:$0xff]  }
  0xaa   :  { %411 = vmatprep.subr.bf16.mxu0 %v1779_v10  ;;  %v1868_v10 = vld [vmem:[%s2677_s4 + $0x1a8] ss:$16 sps:$4 sm:$0xff]  }
  0xad   :  { %412 = vmatpush1.bf16.msra.mxu0 %v1777_v11  ;;  %v1873_v11 = vld [vmem:[%s2677_s4 + $0x1c4] ss:$16 sps:$4 sm:$0xff]  }
  0xae   :  { %413 = vmatprep.subr.bf16.mxu0 %v1785_v12  ;;  %v1876_v12 = vld [vmem:[%s2677_s4 + $0x1cc] ss:$16 sps:$4 sm:$0xff]  }
  0xb1   :  { %414 = vmatpush1.bf16.msra.mxu0 %v1783_v13  ;;  %v1871_v13 = vld [vmem:[%s2677_s4 + $0x1c0] ss:$16 sps:$4 sm:$0xff]  }
  0xb2   :  { %1344 = vmatprep.subr.bf16.mxu0 %v1792_v16  ;;  %v1882_v16 = vld [vmem:[%s2677_s4 + $0x1ec] ss:$16 sps:$4 sm:$0xff]  }
 0x167   :  { %v139_v17 = vpop.f32.mrb[0].mxu0 }
 0x168   :  { %v143_v20 = vpack.c.bf16 %v139_v17, %v139_v17  ;;  %v1691_v21 = vpop.f32.mrb[1].mxu0  ;;  %v1877_v17 = vld [vmem:[%s2677_s4 + $0x1e0] ss:$16 sps:$4 sm:$0xff]  }
 0x169   :  { %v2434_v21 = vshrl.u32 %v33_v54, 7 }
 0x16a   :  { %391 = vmatmul.mubr.bf16.vlgmr.msra.gmra.mrb[0].mxu1 %v143_v20  ;;  %432 = vmatmul.mubr.bf16.vlgmr.msra.gmra.mrb[4].mxu0 %v143_v20  ;;  %v1888_v20 = vld [vmem:[%s2677_s4 + $0x20c] ss:$16 sps:$4 sm:$0xff]  }
 0x16b   :  { %1263 = vmatpush1.bf16.msra.mxu1 %v1787_v18  ;;  %1345 = vmatpush1.bf16.msra.mxu0 %v1790_v19  ;;  %v1880_v18 = vld [vmem:[%s2677_s4 + $0x1e8] ss:$16 sps:$4 sm:$0xff]   ;;  %v1885_v19 = vld [vmem:[%s2677_s4 + $0x204] ss:$16 sps:$4 sm:$0xff]  }
 0x16c   :  { %1264 = vmatprep.subr.bf16.mxu1 %v1795_v22  ;;  %1346 = vmatprep.subr.bf16.mxu0 %v1798_v23  ;;  %v180_v22 = vsub.s32 0, %v2434_v21  ;;  %v2440_v23 = vld [vmem:[%s2676_s3] sm:$0xf] }
 0x16f   :  { %1265 = vmatpush1.bf16.msra.mxu1 %v1793_v24  ;;  %1347 = vmatpush1.bf16.msra.mxu0 %v1796_v25  ;;  %v184_v24 = vsub.s32 1, %v2434_v21  ;;  %v192_v25 = vsub.s32 3, %v2434_v21 }
 0x170   :  { %1266 = vmatprep.subr.bf16.mxu1 %v1801_v26  ;;  %1348 = vmatprep.subr.bf16.mxu0 %v1804_v27  ;;  %v181_v26 = vrot.slane %v2440_v23, %v180_v22 }
 0x171   :  { %v185_v54 = vrot.slane %v2440_v23, %v184_v24  ;;  %v193_v27 = vrot.slane %v2440_v23, %v192_v25 }
 0x173   :  { %1267 = vmatpush1.bf16.msra.mxu1 %v1799_v28  ;;  %1349 = vmatpush1.bf16.msra.mxu0 %v1802_v29 }
 0x174   :  { %1268 = vmatprep.subr.bf16.mxu1 %v1807_v30  ;;  %1350 = vmatprep.subr.bf16.mxu0 %v1810_v31 }
 0x177   :  { %1269 = vmatpush1.bf16.msra.mxu1 %v1805_v32  ;;  %1351 = vmatpush1.bf16.msra.mxu0 %v1808_v33 }
 0x178   :  { %1270 = vmatprep.subr.bf16.mxu1 %v1813_v34  ;;  %1352 = vmatprep.subr.bf16.mxu0 %v1816_v35 }
 0x17b   :  { %1271 = vmatpush1.bf16.msra.mxu1 %v1811_v36  ;;  %1353 = vmatpush1.bf16.msra.mxu0 %v1814_v37 }
 0x17c   :  { %1272 = vmatprep.subr.bf16.mxu1 %v1819_v38  ;;  %1354 = vmatprep.subr.bf16.mxu0 %v1822_v39 }
 0x17f   :  { %1273 = vmatpush1.bf16.msra.mxu1 %v1817_v40  ;;  %1355 = vmatpush1.bf16.msra.mxu0 %v1820_v41 }
 0x180   :  { %1274 = vmatprep.subr.bf16.mxu1 %v1825_v42  ;;  %1356 = vmatprep.subr.bf16.mxu0 %v1828_v43 }
 0x183   :  { %1275 = vmatpush1.bf16.msra.mxu1 %v1823_v44  ;;  %1357 = vmatpush1.bf16.msra.mxu0 %v1826_v45 }
 0x184   :  { %1276 = vmatprep.subr.bf16.mxu1 %v1831_v46  ;;  %1358 = vmatprep.subr.bf16.mxu0 %v1834_v47 }
 0x187   :  { %1277 = vmatpush1.bf16.msra.mxu1 %v1829_v48  ;;  %1359 = vmatpush1.bf16.msra.mxu0 %v1832_v49 }
 0x188   :  { %1278 = vmatprep.subr.bf16.mxu1 %v1837_v50  ;;  %1360 = vmatprep.subr.bf16.mxu0 %v1840_v51 }
 0x18b   :  { %1279 = vmatpush1.bf16.msra.mxu1 %v1835_v52  ;;  %1361 = vmatpush1.bf16.msra.mxu0 %v1838_v53 }
 0x18c   :  { %1280 = vmatprep.subr.bf16.mxu1 %v1843_v55  ;;  %1362 = vmatprep.subr.bf16.mxu0 %v1846_v56  ;;  %v1883_v56 = vld [vmem:[%s2677_s4 + $0x200] ss:$16 sps:$4 sm:$0xff]  }
 0x18f   :  { %1281 = vmatpush1.bf16.msra.mxu1 %v1841_v57  ;;  %1363 = vmatpush1.bf16.msra.mxu0 %v1844_v58  ;;  %v1886_v57 = vld [vmem:[%s2677_s4 + $0x208] ss:$16 sps:$4 sm:$0xff]  }
 0x190   :  { %1282 = vmatprep.subr.bf16.mxu1 %v1849_v59  ;;  %1364 = vmatprep.subr.bf16.mxu0 %v1852_v60  ;;  %v1891_v59 = vld [vmem:[%s2677_s4 + $0x224] ss:$16 sps:$4 sm:$0xff]   ;;  %v1894_v60 = vld [vmem:[%s2677_s4 + $0x22c] ss:$16 sps:$4 sm:$0xff]  }
 0x193   :  { %1283 = vmatpush1.bf16.msra.mxu1 %v1847_v61  ;;  %1365 = vmatpush1.bf16.msra.mxu0 %v1850_v62  ;;  %v1889_v62 = vld [vmem:[%s2677_s4 + $0x220] ss:$16 sps:$4 sm:$0xff]  }
 0x194   :  { %1284 = vmatprep.subr.bf16.mxu1 %v1855_v63  ;;  %1366 = vmatprep.subr.bf16.mxu0 %v1858_v0  ;;  %v1892_v63 = vld [vmem:[%s2677_s4 + $0x228] ss:$16 sps:$4 sm:$0xff]   ;;  %v1897_v0 = vld [vmem:[%s2677_s4 + $0x244] ss:$16 sps:$4 sm:$0xff]  }
 0x197   :  { %1285 = vmatpush1.bf16.msra.mxu1 %v1853_v1  ;;  %1367 = vmatpush1.bf16.msra.mxu0 %v1856_v2  ;;  %v1900_v1 = vld [vmem:[%s2677_s4 + $0x24c] ss:$16 sps:$4 sm:$0xff]   ;;  %v1895_v2 = vld [vmem:[%s2677_s4 + $0x240] ss:$16 sps:$4 sm:$0xff]  }
 0x198   :  { %1286 = vmatprep.subr.bf16.mxu1 %v1861_v4  ;;  %1368 = vmatprep.subr.bf16.mxu0 %v1864_v5  ;;  %v1898_v4 = vld [vmem:[%s2677_s4 + $0x248] ss:$16 sps:$4 sm:$0xff]   ;;  %v1903_v5 = vld [vmem:[%s2677_s4 + $0x264] ss:$16 sps:$4 sm:$0xff]  }
 0x19b   :  { %1287 = vmatpush1.bf16.msra.mxu1 %v1859_v3  ;;  %1369 = vmatpush1.bf16.msra.mxu0 %v1862_v6  ;;  %v1906_v3 = vld [vmem:[%s2677_s4 + $0x26c] ss:$16 sps:$4 sm:$0xff]   ;;  %v1901_v6 = vld [vmem:[%s2677_s4 + $0x260] ss:$16 sps:$4 sm:$0xff]  }
 0x19c   :  { %1288 = vmatprep.subr.bf16.mxu1 %v1867_v7  ;;  %1370 = vmatprep.subr.bf16.mxu0 %v1870_v8  ;;  %v1904_v7 = vld [vmem:[%s2677_s4 + $0x268] ss:$16 sps:$4 sm:$0xff]   ;;  %v1909_v8 = vld [vmem:[%s2677_s4 + $0x284] ss:$16 sps:$4 sm:$0xff]  }
 0x19f   :  { %1289 = vmatpush1.bf16.msra.mxu1 %v1865_v9  ;;  %1371 = vmatpush1.bf16.msra.mxu0 %v1868_v10  ;;  %v1912_v9 = vld [vmem:[%s2677_s4 + $0x28c] ss:$16 sps:$4 sm:$0xff]   ;;  %v188_v10 = vsub.s32 2, %v2434_v21 }
 0x1a0   :  { %1290 = vmatprep.subr.bf16.mxu1 %v1873_v11  ;;  %1372 = vmatprep.subr.bf16.mxu0 %v1876_v12  ;;  %v1907_v11 = vld [vmem:[%s2677_s4 + $0x280] ss:$16 sps:$4 sm:$0xff]   ;;  %v1910_v12 = vld [vmem:[%s2677_s4 + $0x288] ss:$16 sps:$4 sm:$0xff]  }
 0x1a3   :  { %1291 = vmatpush1.bf16.msra.mxu1 %v1871_v13  ;;  %1373 = vmatpush1.bf16.msra.mxu0 %v1874_v14  ;;  %v1915_v13 = vld [vmem:[%s2677_s4 + $0x2a4] ss:$16 sps:$4 sm:$0xff]   ;;  %v1918_v14 = vld [vmem:[%s2677_s4 + $0x2ac] ss:$16 sps:$4 sm:$0xff]  }
 0x1a4   :  { %1292 = vmatprep.subr.bf16.mxu1 %v1879_v15  ;;  %1374 = vmatprep.subr.bf16.mxu0 %v1882_v16  ;;  %v189_v15 = vrot.slane %v2440_v23, %v188_v10  ;;  %v1913_v16 = vld [vmem:[%s2677_s4 + $0x2a0] ss:$16 sps:$4 sm:$0xff]  }
 0x1a5   :  { %v1919_v23 = vld [vmem:[%s2677_s4 + $0x2c0] ss:$16 sps:$4 sm:$0xff]  }
 0x1a7   :  { %1293 = vmatpush1.bf16.msra.mxu1 %v1877_v17  ;;  %1375 = vmatpush1.bf16.msra.mxu0 %v1880_v18  ;;  %v1916_v17 = vld [vmem:[%s2677_s4 + $0x2a8] ss:$16 sps:$4 sm:$0xff]   ;;  %v1921_v18 = vld [vmem:[%s2677_s4 + $0x2c4] ss:$16 sps:$4 sm:$0xff]  }
 0x1a8   :  { %1303 = vmatprep.subr.bf16.mxu1 %v1885_v19  ;;  %1385 = vmatprep.subr.bf16.mxu0 %v1888_v20  ;;  %v1924_v19 = vld [vmem:[%s2677_s4 + $0x2cc] ss:$16 sps:$4 sm:$0xff]  }
 0x23d   :  { %v392_v28 = vpop.f32.mrb[0].mxu1  ;;  %v2453_v29 = vpop.f32.mrb[4].mxu0 }
 0x23e   :  { %v393_v30 = vadd.f32 %v392_v28, %v181_v26  ;;  %v394_v31 = vpop.f32.mrb[1].mxu1  ;;  %v435_v32 = vpop.f32.mrb[5].mxu0  ;;  %v2532_v20 = vadd.f32 %v2453_v29, %v189_v15  ;;  %v1922_v26 = vld [vmem:[%s2677_s4 + $0x2c8] ss:$16 sps:$4 sm:$0xff]   ;;  %v1925_v29 = vld [vmem:[%s2677_s4 + $0x2e0] ss:$16 sps:$4 sm:$0xff]  }
 0x23f   :  { %v395_v33 = vadd.f32 %v394_v31, %v185_v54  ;;  %v436_v34 = vadd.f32 %v435_v32, %v193_v27  ;;  %v396_v35 = vpop.f32.mrb[2].mxu1  ;;  %v437_v36 = vpop.f32.mrb[6].mxu0  ;;  %v1927_v54 = vld [vmem:[%s2677_s4 + $0x2e4] ss:$16 sps:$4 sm:$0xff]   ;;  %v1930_v27 = vld [vmem:[%s2677_s4 + $0x2ec] ss:$16 sps:$4 sm:$0xff]  }
 0x240   :  { %v1504_v37 = vmul.f32 -1.442695, %v393_v30  ;;  %v397_v38 = vpop.f32.mrb[3].mxu1  ;;  %v438_v39 = vpop.f32.mrb[7].mxu0  ;;  %v1506_v28 = vmul.f32 -1.442695, %v2532_v20 }
 0x241   :  { %v1505_v40 = vmul.f32 -1.442695, %v395_v33  ;;  %v1507_v41 = vmul.f32 -1.442695, %v436_v34  ;;  %v1933_v31 = vld [vmem:[%s2677_s4 + $0x304] ss:$16 sps:$4 sm:$0xff]  }
 0x242   :  { %1979 = vpow2.f32 %v1504_v37  ;;  %v1936_v32 = vld [vmem:[%s2677_s4 + $0x30c] ss:$16 sps:$4 sm:$0xff]   ;;  %v1939_v35 = vld [vmem:[%s2677_s4 + $0x324] ss:$16 sps:$4 sm:$0xff]   ;;  %v1937_v37 = vld [vmem:[%s2677_s4 + $0x320] ss:$16 sps:$4 sm:$0xff]  }
 0x243   :  { %1981 = vpow2.f32 %v1505_v40  ;;  %v1942_v36 = vld [vmem:[%s2677_s4 + $0x32c] ss:$16 sps:$4 sm:$0xff]   ;;  %v1940_v38 = vld [vmem:[%s2677_s4 + $0x328] ss:$16 sps:$4 sm:$0xff]   ;;  %v1945_v39 = vld [vmem:[%s2677_s4 + $0x344] ss:$16 sps:$4 sm:$0xff]  }
 0x244   :  { %1983 = vpow2.f32 %v1507_v41  ;;  %v1948_v40 = vld [vmem:[%s2677_s4 + $0x34c] ss:$16 sps:$4 sm:$0xff]   ;;  %v1943_v41 = vld [vmem:[%s2677_s4 + $0x340] ss:$16 sps:$4 sm:$0xff]  }
 0x24c   :  { %v1980_v42 = vpop.eup %1979 }
 0x24d   :  { %v452_v43 = vadd.f32 1.0, %v1980_v42  ;;  %v1982_v44 = vpop.eup %1981  ;;  %v1946_v42 = vld [vmem:[%s2677_s4 + $0x348] ss:$16 sps:$4 sm:$0xff]  }
 0x24e   :  { %v1984_v45 = vpop.eup %1983  ;;  %v453_v46 = vadd.f32 1.0, %v1982_v44  ;;  %v1951_v44 = vld [vmem:[%s2677_s4 + $0x364] ss:$16 sps:$4 sm:$0xff]  }
 0x24f   :  { %1985 = vrcp.f32 %v452_v43  ;;  %v455_v47 = vadd.f32 1.0, %v1984_v45  ;;  %v1954_v45 = vld [vmem:[%s2677_s4 + $0x36c] ss:$16 sps:$4 sm:$0xff]  }
 0x250   :  { %1987 = vrcp.f32 %v453_v46 }
 0x251   :  { %1989 = vrcp.f32 %v455_v47  ;;  %v1949_v47 = vld [vmem:[%s2677_s4 + $0x360] ss:$16 sps:$4 sm:$0xff]  }
 0x252   :  { %1991 = vpow2.f32 %v1506_v28 }
 0x259   :  { %v1986_v48 = vpop.eup %1985 }
 0x25a   :  { %v1988_v49 = vpop.eup %1987  ;;  %v464_v50 = vmul.f32 %v1986_v48, %v393_v30  ;;  %v1928_v30 = vld [vmem:[%s2677_s4 + $0x2e8] ss:$16 sps:$4 sm:$0xff]  }
 0x25b   :  { %v1990_v51 = vpop.eup %1989  ;;  %v465_v52 = vmul.f32 %v1988_v49, %v395_v33  ;;  %v1931_v33 = vld [vmem:[%s2677_s4 + $0x300] ss:$16 sps:$4 sm:$0xff]   ;;  %v1952_v48 = vld [vmem:[%s2677_s4 + $0x368] ss:$16 sps:$4 sm:$0xff]   ;;  %v1957_v49 = vld [vmem:[%s2677_s4 + $0x384] ss:$16 sps:$4 sm:$0xff]  }
 0x25c   :  { %v467_v53 = vmul.f32 %v1990_v51, %v436_v34  ;;  %v468_v58 = vpack.c.bf16 %v464_v50, %v464_v50  ;;  %v1934_v34 = vld [vmem:[%s2677_s4 + $0x308] ss:$16 sps:$4 sm:$0xff]   ;;  %v1992_v43 = vpop.eup %1991  ;;  %v1960_v50 = vld [vmem:[%s2677_s4 + $0x38c] ss:$16 sps:$4 sm:$0xff]   ;;  %v1955_v51 = vld [vmem:[%s2677_s4 + $0x380] ss:$16 sps:$4 sm:$0xff]  }
 0x25d   :  { %v469_v55 = vpack.c.bf16 %v465_v52, %v465_v52  ;;  %v454_v46 = vadd.f32 1.0, %v1992_v43  ;;  %v1958_v52 = vld [vmem:[%s2677_s4 + $0x388] ss:$16 sps:$4 sm:$0xff]  }
 0x25e   :  { %v471_v61 = vpack.c.bf16 %v467_v53, %v467_v53  ;;  %v1963_v53 = vld [vmem:[%s2677_s4 + $0x3a4] ss:$16 sps:$4 sm:$0xff]  }
 0x25f   :  { %1294 = vmatprep.mubr.bf16.mxu1 %v469_v55  ;;  %1376 = vmatprep.mubr.bf16.mxu0 %v469_v55  ;;  %1993 = vrcp.f32 %v454_v46  ;;  %v1966_v55 = vld [vmem:[%s2677_s4 + $0x3ac] ss:$16 sps:$4 sm:$0xff]  }
 0x260   :  { %1295 = vmatmul.mubr.bf16.vlgmr.msra.gmra.mrb[4].mxu1 %v468_v58  ;;  %1377 = vmatmul.mubr.bf16.vlgmr.msra.gmra.mrb[8].mxu0 %v468_v58  ;;  %v1969_v58 = vld [vmem:[%s2677_s4 + $0x3c4] ss:$16 sps:$4 sm:$0xff]  }
 0x261   :  { %1304 = vmatpush1.bf16.msra.mxu1 %v1883_v56  ;;  %1386 = vmatpush1.bf16.msra.mxu0 %v1886_v57  ;;  %v1961_v56 = vld [vmem:[%s2677_s4 + $0x3a0] ss:$16 sps:$4 sm:$0xff]   ;;  %v1964_v57 = vld [vmem:[%s2677_s4 + $0x3a8] ss:$16 sps:$4 sm:$0xff]  }
 0x262   :  { %1335 = vmatprep.mubr.bf16.mxu1 %v471_v61  ;;  %1417 = vmatprep.mubr.bf16.mxu0 %v471_v61  ;;  %v1970_v61 = vld [vmem:[%s2677_s4 + $0x3c8] ss:$16 sps:$4 sm:$0xff]  }
 0x263   :  { %1305 = vmatprep.subr.bf16.mxu1 %v1891_v59  ;;  %1387 = vmatprep.subr.bf16.mxu0 %v1894_v60  ;;  %v1972_v59 = vld [vmem:[%s2677_s4 + $0x3cc] ss:$16 sps:$4 sm:$0xff]   ;;  %v1967_v60 = vld [vmem:[%s2677_s4 + $0x3c0] ss:$16 sps:$4 sm:$0xff]  }
 0x265   :  { %1306 = vmatpush1.bf16.msra.mxu1 %v1889_v62  ;;  %1388 = vmatpush1.bf16.msra.mxu0 %v1892_v63  ;;  %v1975_v62 = vld [vmem:[%s2677_s4 + $0x3e4] ss:$16 sps:$4 sm:$0xff]   ;;  %v1978_v63 = vld [vmem:[%s2677_s4 + $0x3ec] ss:$16 sps:$4 sm:$0xff]  }
 0x266   :  { %1307 = vmatprep.subr.bf16.mxu1 %v1897_v0  ;;  %1389 = vmatprep.subr.bf16.mxu0 %v1900_v1  ;;  %v1973_v1 = vld [vmem:[%s2677_s4 + $0x3e0] ss:$16 sps:$4 sm:$0xff]  }
 0x269   :  { %1308 = vmatpush1.bf16.msra.mxu1 %v1895_v2  ;;  %1390 = vmatpush1.bf16.msra.mxu0 %v1898_v4  ;;  %v1994_v0 = vpop.eup %1993  ;;  %v1976_v2 = vld [vmem:[%s2677_s4 + $0x3e8] ss:$16 sps:$4 sm:$0xff]   ;;  %s2039_s4 = smov [#allocation2]  }
 0x26a   :  { %1309 = vmatprep.subr.bf16.mxu1 %v1903_v5  ;;  %1391 = vmatprep.subr.bf16.mxu0 %v1906_v3  ;;  %v466_v4 = vmul.f32 %v1994_v0, %v2532_v20  ;;  %v600_v3 = vld [vmem:[%s2678_s5] sm:$0xf]  ;;  %s1464_s5 = sshll.u32 %s2039_s4, 4  ;;  %s1465_s5 = int_to_ptr.vmem [resolvable:$true] %s1464_s5 }
 0x26b   :  { %s2011_s27 = scalar_lea.vmem %s1465_s5, 512  ;;  %p2016_p1 = scmp.lt.s32.totalorder %s1465_s5, %s1465_s5 }
 0x26c   :  { %v470_v5 = vpack.c.bf16 %v466_v4, %v466_v4  ;;  %p2012_p0 = scmp.ne.s32.totalorder %s1465_s5, %s2011_s27  ;;  %p2017_p2 = scmp.lt.s32.totalorder %s2011_s27, %s2011_s27 }
 0x26d   :  { %1310 = vmatpush1.bf16.msra.mxu1 %v1901_v6  ;;  %1392 = vmatpush1.bf16.msra.mxu0 %v1904_v7  ;;  %v605_v6 = vrot.slane %v600_v3, %v180_v22  ;;  %v613_v7 = vrot.slane %v600_v3, %v188_v10 }
 0x26e   :  { %1311 = vmatprep.subr.bf16.mxu1 %v1909_v8  ;;  %1393 = vmatprep.subr.bf16.mxu0 %v1912_v9  ;;  %v609_v8 = vrot.slane %v600_v3, %v184_v24  ;;  %v617_v9 = vrot.slane %v600_v3, %v192_v25  ;;  %p2018_p3 = por %p2017_p2, %p2016_p1 }
 0x270   :  { %p2019_p4 = pnand %p2018_p3, %p2012_p0 }
 0x271   :  { %1312 = vmatpush1.bf16.msra.mxu1 %v1907_v11  ;;  %1394 = vmatpush1.bf16.msra.mxu0 %v1910_v12 }
 0x272   :  { %1313 = vmatprep.subr.bf16.mxu1 %v1915_v13  ;;  %1395 = vmatprep.subr.bf16.mxu0 %v1918_v14 }
 0x275   :  { %1314 = vmatpush1.bf16.msra.mxu1 %v1913_v16  ;;  %1396 = vmatpush1.bf16.msra.mxu0 %v1916_v17 }
 0x276   :  { %1315 = vmatprep.subr.bf16.mxu1 %v1921_v18  ;;  %1397 = vmatprep.subr.bf16.mxu0 %v1924_v19 }
 0x279   :  { %1316 = vmatpush1.bf16.msra.mxu1 %v1919_v23  ;;  %1398 = vmatpush1.bf16.msra.mxu0 %v1922_v26 }
 0x27a   :  { %1317 = vmatprep.subr.bf16.mxu1 %v1927_v54  ;;  %1399 = vmatprep.subr.bf16.mxu0 %v1930_v27 }
 0x27d   :  { %1318 = vmatpush1.bf16.msra.mxu1 %v1925_v29  ;;  %1400 = vmatpush1.bf16.msra.mxu0 %v1928_v30 }
 0x27e   :  { %1319 = vmatprep.subr.bf16.mxu1 %v1933_v31  ;;  %1401 = vmatprep.subr.bf16.mxu0 %v1936_v32 }
 0x281   :  { %1320 = vmatpush1.bf16.msra.mxu1 %v1931_v33  ;;  %1402 = vmatpush1.bf16.msra.mxu0 %v1934_v34 }
 0x282   :  { %1321 = vmatprep.subr.bf16.mxu1 %v1939_v35  ;;  %1403 = vmatprep.subr.bf16.mxu0 %v1942_v36 }
 0x285   :  { %1322 = vmatpush1.bf16.msra.mxu1 %v1937_v37  ;;  %1404 = vmatpush1.bf16.msra.mxu0 %v1940_v38 }
 0x286   :  { %1323 = vmatprep.subr.bf16.mxu1 %v1945_v39  ;;  %1405 = vmatprep.subr.bf16.mxu0 %v1948_v40 }
 0x289   :  { %1324 = vmatpush1.bf16.msra.mxu1 %v1943_v41  ;;  %1406 = vmatpush1.bf16.msra.mxu0 %v1946_v42 }
 0x28a   :  { %1325 = vmatprep.subr.bf16.mxu1 %v1951_v44  ;;  %1407 = vmatprep.subr.bf16.mxu0 %v1954_v45 }
 0x28d   :  { %1326 = vmatpush1.bf16.msra.mxu1 %v1949_v47  ;;  %1408 = vmatpush1.bf16.msra.mxu0 %v1952_v48 }
 0x28e   :  { %1327 = vmatprep.subr.bf16.mxu1 %v1957_v49  ;;  %1409 = vmatprep.subr.bf16.mxu0 %v1960_v50 }
 0x291   :  { %1328 = vmatpush1.bf16.msra.mxu1 %v1955_v51  ;;  %1410 = vmatpush1.bf16.msra.mxu0 %v1958_v52 }
 0x292   :  { %1329 = vmatprep.subr.bf16.mxu1 %v1963_v53  ;;  %1411 = vmatprep.subr.bf16.mxu0 %v1966_v55 }
 0x295   :  { %1330 = vmatpush1.bf16.msra.mxu1 %v1961_v56  ;;  %1412 = vmatpush1.bf16.msra.mxu0 %v1964_v57 }
 0x296   :  { %1331 = vmatprep.subr.bf16.mxu1 %v1969_v58  ;;  %1413 = vmatprep.subr.bf16.mxu0 %v1972_v59 }
 0x299   :  { %1332 = vmatpush1.bf16.msra.mxu1 %v1967_v60  ;;  %1414 = vmatpush1.bf16.msra.mxu0 %v1970_v61 }
 0x29a   :  { %1333 = vmatprep.subr.bf16.mxu1 %v1975_v62  ;;  %1415 = vmatprep.subr.bf16.mxu0 %v1978_v63 }
 0x29d   :  { %1334 = vmatpush1.bf16.msra.mxu1 %v1973_v1  ;;  %1416 = vmatpush1.bf16.msra.mxu0 %v1976_v2 }
 0x2a0   :  { %1336 = vmatmul.mubr.bf16.vlgmr.msra.gmra.mrb[4].mxu1 %v470_v5  ;;  %1418 = vmatmul.mubr.bf16.vlgmr.msra.gmra.mrb[8].mxu0 %v470_v5 }
 0x373   :  { %v1337_v11 = vpop.f32.mrb[4].mxu1  ;;  %v1419_v12 = vpop.f32.mrb[8].mxu0 }
 0x374   :  { %v1716_v13 = vadd.f32 %v1337_v11, %v605_v6  ;;  %v1718_v14 = vadd.f32 %v1419_v12, %v613_v7  ;;  %v1339_v15 = vpop.f32.mrb[5].mxu1  ;;  %v1421_v16 = vpop.f32.mrb[9].mxu0 }
 0x375   :  { %v1717_v17 = vadd.f32 %v1339_v15, %v609_v8  ;;  %v1719_v18 = vadd.f32 %v1421_v16, %v617_v9  ;;  %v1341_v19 = vpop.f32.mrb[6].mxu1  ;;  %v1423_v20 = vpop.f32.mrb[10].mxu0 }
 0x376   :  { %v1636_v22 = vmul.f32 -1.442695, %v1716_v13  ;;  %v1638_v23 = vmul.f32 -1.442695, %v1718_v14  ;;  %v1342_v26 = vpop.f32.mrb[7].mxu1  ;;  %v1424_v10 = vpop.f32.mrb[11].mxu0 }
 0x377   :  { %v1637_v54 = vmul.f32 -1.442695, %v1717_v17  ;;  %v1639_v27 = vmul.f32 -1.442695, %v1719_v18 }
 0x378   :  { %1995 = vpow2.f32 %v1636_v22 }
 0x379   :  { %1997 = vpow2.f32 %v1638_v23 }
 0x37a   :  { %1999 = vpow2.f32 %v1637_v54 }
 0x37b   :  { %2001 = vpow2.f32 %v1639_v27 }
 0x382   :  { %v1996_v21 = vpop.eup %1995 }
 0x383   :  { %v1998_v24 = vpop.eup %1997  ;;  %v1438_v25 = vadd.f32 1.0, %v1996_v21 }
 0x384   :  { %v2000_v28 = vpop.eup %1999  ;;  %v1440_v29 = vadd.f32 1.0, %v1998_v24 }
 0x385   :  { %v2002_v30 = vpop.eup %2001  ;;  %2003 = vrcp.f32 %v1438_v25  ;;  %v1439_v31 = vadd.f32 1.0, %v2000_v28 }
 0x386   :  { %2005 = vrcp.f32 %v1440_v29  ;;  %v1441_v32 = vadd.f32 1.0, %v2002_v30 }
 0x387   :  { %2007 = vrcp.f32 %v1439_v31 }
 0x388   :  { %2009 = vrcp.f32 %v1441_v32 }
 0x38f   :  { %v2004_v33 = vpop.eup %2003 }
 0x390   :  { %v2006_v34 = vpop.eup %2005  ;;  %v1450_v35 = vmul.f32 %v2004_v33, %v1716_v13 }
 0x391   :  { %v2008_v36 = vpop.eup %2007  ;;  %v1452_v37 = vmul.f32 %v2006_v34, %v1718_v14 }
 0x392   :  { %v2010_v38 = vpop.eup %2009  ;;  %1454 = vst [vmem:[#allocation2] sm:$0xff] %v1450_v35  ;;  %v1451_v39 = vmul.f32 %v2008_v36, %v1717_v17 }
 0x393   :  { %1456 = vst [vmem:[#allocation2 + $0x10] sm:$0xff] %v1452_v37  ;;  %v1453_v40 = vmul.f32 %v2010_v38, %v1719_v18 }
 0x394   :  { %1455 = vst [vmem:[#allocation2 + $0x8] sm:$0xff] %v1451_v39 }
 0x395   :  { %1457 = vst [vmem:[#allocation2 + $0x18] sm:$0xff] %v1453_v40 }
 0x396   :  { %2022 = shalt.err (!%p2019_p4)
}
 0x397   :  { %s2023_s29 = scalar_lea.hbm %s2679_s6, 512 }
 0x398   :  { %p2024_p5 = scmp.ne.s32.totalorder %s2679_s6, %s2023_s29  ;;  %p2027_p6 = scmp.lt.u32.totalorder %s2023_s29, %s2679_s6 }
 0x39a   :  { %p2029_p7 = pnand %p2027_p6, %p2024_p5 }
 0x39c   :  { %2032 = shalt.err (!%p2029_p7)
}
 0x39d   :  { %1467 = dma.vmem_to_hbm [thread:$0]  %s1465_s5, 512, %s2679_s6, [#allocation3]  }
 0x39e   :  { %2033 = dma.done.wait [#allocation3], 512  }
 0x39f   :  { %2034 = vsyncadd [#allocation3], 4294966784 }
 0x3a0   :  { %1471 = vsyncpa [#allocation3], 1 }

</bundles_post_ra>
